<compile_context>
chip_gen: v5e
topology: v5e:2x2
jax: 0.10.0
libtpu: 0.0.40
codegen_flags: <defaults>
</compile_context>

<pallas_src>
import jax
import jax.numpy as jnp
from jax.experimental import pallas as pl
from jax.experimental.pallas import tpu as pltpu


def _lowbound_kernel(x_ref, n_ref, o_ref):
    # x_ref: (1, 1 or C_blk, L) ; n_ref / o_ref: (1, C_blk, L)
    xb = x_ref[...].astype(jnp.float32)
    nb = n_ref[...].astype(jnp.float32)
    # (1 - x) + x * n == 1 + x * (n - 1); clamp(max=1)
    t = xb * (nb - 1.0) + 1.0
    o_ref[...] = jnp.minimum(t, 1.0).astype(o_ref.dtype)


def _choose_blocks(C_n, HW_pad, itemsize,
                   target_tile_bytes=2 << 20, max_lane_block=4096):
    """Pick (C_blk, L_blk) for the (1, C_blk, L_blk) tiles.

    L_blk: multiple of 128 (HW_pad is already a multiple of 128), capped.
    C_blk: full channel extent if it fits the per-tile budget, otherwise a
           multiple of 8 sized to the budget.
    """
    L_blk = min(HW_pad, max_lane_block)
    if C_n * L_blk * itemsize <= target_tile_bytes:
        C_blk = C_n
    else:
        C_blk = max(8, (target_tile_bytes // (L_blk * itemsize)) // 8 * 8)
        C_blk = min(C_blk, C_n)
    return C_blk, L_blk


def lowbound_block(x, n_x):
    """Pallas implementation of Lowbound_Block.forward.

    x   : (N, 1, H, W) or (N, C_n, H, W)
    n_x : (N, C_n, H, W)
    returns (N, C_n, H, W) with dtype of n_x.
    """
    N, Cx, H, W = x.shape
    Nn, C_n, Hn, Wn = n_x.shape
    assert (N, H, W) == (Nn, Hn, Wn)
    assert Cx == 1 or Cx == C_n  # torch.expand semantics

    HW = H * W
    out_dtype = n_x.dtype
    itemsize = jnp.dtype(out_dtype).itemsize

    # Flatten spatial dims into one lane-dense last axis.
    x3 = x.reshape(N, Cx, HW)
    n3 = n_x.reshape(N, C_n, HW)

    # Pad the flattened spatial axis to a multiple of 128 so block last dims
    # are always legal and lane-dense.
    HW_pad = ((HW + 127) // 128) * 128
    if HW_pad != HW:
        pad = HW_pad - HW
        x3 = jnp.pad(x3, ((0, 0), (0, 0), (0, pad)))
        n3 = jnp.pad(n3, ((0, 0), (0, 0), (0, pad)))

    C_blk, L_blk = _choose_blocks(C_n, HW_pad, itemsize)

    # Grid: batch (outer), spatial chunk, channel chunk (innermost) so the
    # broadcast x tile stays resident across the channel axis.
    grid = (N, pl.cdiv(HW_pad, L_blk), pl.cdiv(C_n, C_blk))

    if Cx == 1:
        # Broadcast x across channels: block index ignores the channel axis.
        x_spec = pl.BlockSpec((1, 1, L_blk), lambda i, l, j: (i, 0, l))
    else:
        x_spec = pl.BlockSpec((1, C_blk, L_blk), lambda i, l, j: (i, j, l))
    n_spec = pl.BlockSpec((1, C_blk, L_blk), lambda i, l, j: (i, j, l))
    o_spec = pl.BlockSpec((1, C_blk, L_blk), lambda i, l, j: (i, j, l))

    out3 = pl.pallas_call(
        _lowbound_kernel,
        out_shape=jax.ShapeDtypeStruct((N, C_n, HW_pad), out_dtype),
        grid=grid,
        in_specs=[x_spec, n_spec],
        out_specs=o_spec,
        compiler_params=pltpu.CompilerParams(
            dimension_semantics=("parallel", "parallel", "parallel"),
        ),
    )(x3, n3)

    if HW_pad != HW:
        out3 = out3[:, :, :HW]
    return out3.reshape(N, C_n, H, W)


def lowbound_block_ref(x, n_x):
    """Pure-JAX reference matching the PyTorch module."""
    N, _, H, W = x.shape
    _, C_n, _, _ = n_x.shape
    x_expanded = jnp.broadcast_to(x, (N, C_n, H, W))
    u_x = 1.0 - x_expanded
    t_x = u_x + x_expanded * n_x
    return jnp.minimum(t_x, 1.0)


if __name__ == "__main__":
    key = jax.random.PRNGKey(0)
    k1, k2, k3, k4 = jax.random.split(key, 4)

    # Primary test: x has a single channel that gets expanded to C_n channels.
    N, C_n, H, W = 2, 4, 16, 16
    x = jax.random.uniform(k1, (N, 1, H, W), dtype=jnp.float32)
    n_x = jax.random.uniform(k2, (N, C_n, H, W), dtype=jnp.float32) * 2.0

    out = lowbound_block(x, n_x)
    out = jax.block_until_ready(out)

    ref = lowbound_block_ref(x, n_x)
    assert out.shape == (N, C_n, H, W)
    assert jnp.allclose(out, ref, atol=1e-6, rtol=1e-6)

    # Secondary test: non-128-divisible H*W (exercises the lane-padding path)
    # with matching channel counts (no broadcast).
    N2, C2, H2, W2 = 1, 3, 7, 9
    x2 = jax.random.uniform(k3, (N2, C2, H2, W2), dtype=jnp.float32)
    n2 = jax.random.uniform(k4, (N2, C2, H2, W2), dtype=jnp.float32) * 2.0
    out2 = jax.block_until_ready(lowbound_block(x2, n2))
    ref2 = lowbound_block_ref(x2, n2)
    assert jnp.allclose(out2, ref2, atol=1e-6, rtol=1e-6)

    print("KERNEL_OK")
</pallas_src>

<mosaic_0001>
module attributes {stable_mosaic.version = 11 : i64} {
  func.func @_lowbound_kernel(%arg0: i32, %arg1: i32, %arg2: i32, %arg3: memref<1x1x256xf32, #tpu.memory_space<vmem>>, %arg4: memref<1x4x256xf32, #tpu.memory_space<vmem>>, %arg5: memref<1x4x256xf32, #tpu.memory_space<vmem>>) attributes {dimension_semantics = [#tpu.dimension_semantics<parallel>, #tpu.dimension_semantics<parallel>, #tpu.dimension_semantics<parallel>], iteration_bounds = array<i64: 2, 1, 1>, scalar_prefetch = 0 : i64, scratch_operands = 0 : i64, tpu.core_type = #tpu.core_type<tc>, window_params = [{transform_indices = @transform_0, window_bounds = array<i64: 1, 1, 256>}, {transform_indices = @transform_1, window_bounds = array<i64: 1, 4, 256>}, {transform_indices = @transform_2, window_bounds = array<i64: 1, 4, 256>}]} {
    %c0 = arith.constant 0 : index
    %c0_0 = arith.constant 0 : index
    %c0_1 = arith.constant 0 : index
    %0 = vector.load %arg3[%c0, %c0_0, %c0_1] : memref<1x1x256xf32, #tpu.memory_space<vmem>>, vector<1x1x256xf32>
    %c0_2 = arith.constant 0 : index
    %c0_3 = arith.constant 0 : index
    %c0_4 = arith.constant 0 : index
    %1 = vector.load %arg4[%c0_2, %c0_3, %c0_4] : memref<1x4x256xf32, #tpu.memory_space<vmem>>, vector<1x4x256xf32>
    %cst = arith.constant 1.000000e+00 : f32
    %2 = vector.broadcast %cst : f32 to vector<1x4x256xf32>
    %3 = arith.subf %1, %2 : vector<1x4x256xf32>
    %4 = vector.broadcast %0 : vector<1x1x256xf32> to vector<1x4x256xf32>
    %5 = arith.mulf %4, %3 : vector<1x4x256xf32>
    %cst_5 = arith.constant 1.000000e+00 : f32
    %6 = vector.broadcast %cst_5 : f32 to vector<1x4x256xf32>
    %7 = arith.addf %5, %6 : vector<1x4x256xf32>
    %cst_6 = arith.constant 1.000000e+00 : f32
    %8 = vector.broadcast %cst_6 : f32 to vector<1x4x256xf32>
    %9 = arith.minimumf %7, %8 : vector<1x4x256xf32>
    %c0_7 = arith.constant 0 : index
    %c0_8 = arith.constant 0 : index
    %c0_9 = arith.constant 0 : index
    %10 = vector.load %arg5[%c0_7, %c0_8, %c0_9] : memref<1x4x256xf32, #tpu.memory_space<vmem>>, vector<1x4x256xf32>
    tpu.vector_store %arg5[%c0_7, %c0_8, %c0_9], %9 {strides = array<i32>} : memref<1x4x256xf32, #tpu.memory_space<vmem>>, vector<1x4x256xf32>,
    return
  }
  func.func @transform_0(%arg0: i32, %arg1: i32, %arg2: i32) -> (i32, i32, i32) {
    %c0_i32 = arith.constant 0 : i32
    %c0_i32_0 = arith.constant 0 : i32
    return %arg0, %c0_i32, %arg1 : i32, i32, i32
  }
  func.func @transform_1(%arg0: i32, %arg1: i32, %arg2: i32) -> (i32, i32, i32) {
    %c0_i32 = arith.constant 0 : i32
    return %arg0, %arg2, %arg1 : i32, i32, i32
  }
  func.func @transform_2(%arg0: i32, %arg1: i32, %arg2: i32) -> (i32, i32, i32) {
    %c0_i32 = arith.constant 0 : i32
    return %arg0, %arg2, %arg1 : i32, i32, i32
  }
}

</mosaic_0001>

<bundles_post_ra>
// kernel: tpu_custom_call.1
= control target key start
LH: loop header
LB: loop body
LE: loop exit
PB: predicated region body
PF: predicated region fallthrough
CT: control target
= control target key end

     0   :  { %7 = vsyncpa [#allocation3], 0  ;;  %s792_s0 = inlined_call_operand.hbm [shape: f32[2,1,256], index: 0, kind: input, shape index: {}]   ;;  %s793_s1 = inlined_call_operand.hbm [shape: f32[2,4,256], index: 1, kind: input, shape index: {}]   ;;  %s794_s2 = inlined_call_operand.hbm [shape: f32[2,4,256], index: 2, kind: output, shape index: {}]  }
   0x1   :  { %9 = vsyncpa [#allocation3 + $0x1], 0 }
   0x2   :  { %10 = vsyncpa [#allocation6], 0 }
   0x3   :  { %12 = vsyncpa [#allocation6 + $0x1], 0 }
   0x4   :  { %13 = vsyncpa [#allocation4], 0 }
   0x5   :  { %15 = vsyncpa [#allocation4 + $0x1], 0  ;;  %s654_s9 = smov 0   ;;  %s656_s10 = smov 0  }
   0x6   :  { %s658_s11 = smov 0   ;;  %s660_s12 = smov 0  }
   0x7   :  { %s662_s13 = smov 0   ;;  %s664_s14 = smov 0  }
   0x8 LB: > { %s403_s15 = sadd.s32 4294967295, %s637_s14   ;;  %s404_s16 = sadd.s32 4294967294, %s637_s14   ;;  %s637_s14 = sphi %s664_s14, %s21_s14   ;;  %s633_s13 = sphi %s662_s13, %s804_s13   ;;  %s629_s12 = sphi %s660_s12, %s803_s12   ;;  %s625_s11 = sphi %s658_s11, %s802_s11   ;;  %s621_s10 = sphi %s656_s10, %s801_s10   ;;  %s617_s9 = sphi %s654_s9, %s800_s9  }
   0x9   : > { %s40_s17 = sadd.s32 1, %s633_s13  ;;  %s49_s18 = sadd.s32 1, %s625_s11 }
   0xa   : > { %p42_p0 = scmp.ge.s32.totalorder %s40_s17, 2  ;;  %p56_p1 = scmp.ne.s32.totalorder %s625_s11, %s621_s10 }
   0xb   : > { %p57_p2 = scmp.eq.s32.totalorder %s637_s14, 0  ;;  %p62_p3 = scmp.ne.s32.totalorder %s621_s10, %s617_s9 }
   0xc   : > { %s806_s17 = smov (%p42_p0, %s40_s17), 0  ;;  %p63_p5 = scmp.eq.s32.totalorder %s403_s15, 0 }
   0xd   : > { %p695_p4 = por %p57_p2, %p56_p1  ;;  %s44_s20 = ssub.s32 %s633_s13, %s806_s17 }
   0xe   : > { %p120_p6 = scmp.eq.s32.totalorder %s403_s15, 1  ;;  %p47_p7 = scmp.eq.s32.totalorder %s44_s20, 0 }
   0xf   : > { %p701_p8 = por %p63_p5, %p62_p3  ;;  %p126_p10 = scmp.eq.s32.totalorder %s404_s16, 1 }
  0x10   : > { %p705_p9 = por %p120_p6, %p56_p1  ;;  %p406_p12 = scmp.ge.s32.totalorder %s637_s14, 2 }
  0x11   : > { %s710_s23 = scalar_select %p47_p7, %s625_s11, %s49_s18  }
  0x12   : > { %p712_p11 = por %p126_p10, %p62_p3  ;;  %p441_p13 = scmp.lt.s32.totalorder %s637_s14, 2 }
  0x13   : > { %s146_s25 = sand.u32 1, %s625_s11   ;;  %s408_s27 = sshll.u32 %s633_s13, 1 }
  0x14   : > { %s407_s26 = sshll.u32 %s146_s25, 1  ;;  %s156_s30 = scalar_lea.hbm %s792_s0, %s408_s27 }
  0x15   : > { %s150_s3 = scalar_lea.vmem [#allocation2], %s407_s26  ;;  %s158_s5 = sshll.u32 %s156_s30, 4  ;;  %s159_s5 = int_to_ptr.hbm [resolvable:$true] %s158_s5 }
  0x16   : > { %s160_s4 = sshll.u32 %s150_s3, 4  ;;  %p725_p0 = pnand %p441_p13, %p695_p4  ;;  %s161_s4 = int_to_ptr.vmem [resolvable:$true] %s160_s4 }
  0x17   : > { %p412_p1 = scmp.ge.s32.totalorder %s637_s14, 1  ;;  %p189_p2 = scmp.lt.s32.totalorder %s637_s14, 3 }
  0x18   : > { %s147_s7 = scalar_lea.sflag [#allocation3], %s146_s25  ;;  %s409_s8 = sshll.u32 %s146_s25, 3 }
  0x19   : > { %433 = dma.hbm_to_vmem [thread:$0]  (!%p725_p0), %s159_s5, 32, %s161_s4, %s147_s7  }
  0x1a   : > { %p190_p3 = pnand %p412_p1, %p189_p2  ;;  %s422_s15 = sshll.u32 %s633_s13, 3 }
  0x1b   : > { %s180_s20 = scalar_lea.hbm %s793_s1, %s422_s15  ;;  %s171_s26 = scalar_lea.vmem [#allocation5], %s409_s8 }
  0x1c   : > { %s184_s19 = sshll.u32 %s171_s26, 4  ;;  %s182_s27 = sshll.u32 %s180_s20, 4  ;;  %s185_s19 = int_to_ptr.vmem [resolvable:$true] %s184_s19  ;;  %s183_s27 = int_to_ptr.hbm [resolvable:$true] %s182_s27 }
  0x1d   : > { %s168_s28 = scalar_lea.sflag [#allocation6], %s146_s25  ;;  %193 = sbr.rel (%p190_p3) target bundleno = 61 (0x3d), region = 28 }
  0x1e   : > { %436 = dma.hbm_to_vmem [thread:$0]  (!%p725_p0), %s183_s27, 128, %s185_s19, %s168_s28  }
  0x1f   : > { %s740_s29 = sand.u32 (!%p190_p3), 1, %s621_s10  }
  0x20   : > { %s413_s30 = sshll.u32 (!%p190_p3), %s740_s29, 1  ;;  %s196_s3 = scalar_lea.sflag (!%p190_p3), [#allocation3], %s740_s29 }
  0x21   : > { %s199_s4 = scalar_lea.vmem (!%p190_p3), [#allocation2], %s413_s30 }
  0x22   : > { %604 = dma.done.wait (%p701_p8), %s196_s3, 32  }
  0x23   : > { %606 = vsyncadd (%p701_p8), %s196_s3, 4294967264  ;;  %s414_s25 = sshll.u32 %s740_s29, 3  ;;  %s206_s5 = scalar_lea.sflag [#allocation6], %s740_s29 }
  0x24   : > { %s209_s6 = scalar_lea.vmem [#allocation5], %s414_s25 }
  0x25   : > { %608 = dma.done.wait (%p701_p8), %s206_s5, 128  }
  0x26   : > { %610 = vsyncadd (%p701_p8), %s206_s5, 4294967168  ;;  %v240_v0 = vld [vmem:[%s209_s6] sm:$0xff]  ;;  %v239_v2 = vld [vmem:[%s199_s4] sm:$0x3]  ;;  %s423_s7 = sshll.u32 %s629_s12, 3  ;;  %s235_s21 = scalar_lea.vmem [#allocation7], %s414_s25 }
  0x27   : > { %v416_v1 = vadd.f32 -1.0, %v240_v0  ;;  %v243_v3 = vperm.slane %v239_v2, 0  ;;  %v244_v4 = vperm.slane %v239_v2, 1  ;;  %s282_s16 = scalar_lea.hbm %s794_s2, %s423_s7  ;;  %s284_s18 = sshll.u32 %s235_s21, 4  ;;  %vm262_vm0 = vcmask 1043456   ;;  %s285_s18 = int_to_ptr.vmem [resolvable:$true] %s284_s18 }
  0x28   : > { %s286_s20 = sshll.u32 %s282_s16, 4  ;;  %s267_s12 = scalar_lea.sflag [#allocation4], %s740_s29  ;;  %s287_s20 = int_to_ptr.hbm [resolvable:$true] %s286_s20 }
  0x29   : > { %248 = vst [vmem:[#allocation1] ss:$2 sm:$0xff] %v416_v1  ;;  %s565_s26 = sshra.s32 %s287_s20, 4  ;;  %s571_s30 = scalar_lea.hbm %s794_s2, 16  ;;  %s566_s26 = int_to_ptr.hbm [resolvable:$true] %s565_s26 }
  0x2a   : > { %s567_s19 = scalar_lea.hbm %s566_s26, 8  ;;  %p572_p7 = scmp.lt.s32.totalorder %s566_s26, %s794_s2 }
  0x2b   : > { %p568_p4 = scmp.ne.s32.totalorder %s566_s26, %s567_s19  ;;  %p573_p8 = scmp.lt.s32.totalorder %s571_s30, %s567_s19 }
  0x2d   : > { %p569_p5 = pnand %p568_p4, %p705_p9  ;;  %p574_p10 = por %p573_p8, %p572_p7 }
  0x2f   : > { %p570_p6 = pneg %p569_p5 }
  0x30   : > { %v249_v5 = vld.sshfl [vmem:[#allocation1] sm:$0xff pattern:$0x75316420]  ;;  %v250_v6 = vld.sshfl [vmem:[#allocation1 + $0x8] sm:$0xff pattern:$0x75316420] }
  0x31   : > { %v253_v7 = vmul.f32 %v249_v5, %v243_v3  ;;  %v254_v8 = vmul.f32 %v250_v6, %v244_v4  ;;  %p575_p13 = pnand %p574_p10, %p570_p6 }
  0x33   : > { %v255_v9 = vadd.f32 1.0, %v253_v7  ;;  %v256_v10 = vadd.f32 1.0, %v254_v8 }
  0x35   : > { %v258_v11 = vmin.f32 %v256_v10, 1.0  ;;  %v257_v12 = vmin.f32 %v255_v9, 1.0 }
  0x37   : > { %v261_v13 = vrot.slane %v258_v11, 4 }
  0x39   : > { %v263_v14 = vsel %vm262_vm0, %v257_v12, %v261_v13 }
  0x3a   : > { %265 = vst [vmem:[%s235_s21] sm:$0xff] %v263_v14 }
  0x3b   : > { %578 = shalt.err (!%p575_p13)
}
  0x3c   : > { %428 = dma.vmem_to_hbm [thread:$0]  (%p705_p9), %s285_s18, 128, %s287_s20, %s267_s12  }
  0x3d PF: > { %s298_s29 = sand.u32 1, %s617_s9   ;;  %p438_p0 = pnand %p406_p12, %p712_p11 }
  0x3e   : > { %s299_s25 = scalar_lea.sflag [#allocation4], %s298_s29 }
  0x3f   : > { %p439_p1 = pneg %p438_p0 }
  0x41   : > { %612 = dma.done.wait (%p439_p1), %s299_s25, 128  }
  0x42   : > { %614 = vsyncadd (%p439_p1), %s299_s25, 4294967168  ;;  %s21_s14 = sadd.s32 1, %s637_s14   ;;  %s800_s9 = smov %s621_s10 }
  0x43   : > { %p18_p2 = scmp.ge.s32.totalorder %s21_s14, 4   ;;  %s801_s10 = smov %s625_s11 }
  0x44   : > { %s802_s11 = smov %s710_s23  ;;  %s803_s12 = smov %s633_s13 }
  0x45   : > { %s804_s13 = smov %s806_s17  ;;  %20 = sbr.rel (!%p18_p2) target bundleno = 8 (0x8), region = 86 }
  0x4a   :  { %305 = vsyncpa [#allocation3], 1 }
  0x4b   :  { %307 = vsyncpa [#allocation3 + $0x1], 1 }
  0x4c   :  { %308 = vsyncpa [#allocation6], 1 }
  0x4d   :  { %310 = vsyncpa [#allocation6 + $0x1], 1 }
  0x4e   :  { %311 = vsyncpa [#allocation4], 1 }
  0x4f   :  { %313 = vsyncpa [#allocation4 + $0x1], 1 }

</bundles_post_ra>
